<compile_context>
chip_gen: v7x
topology: tpu7x:2x2x1
jax: 0.10.0
libtpu: 0.0.40
codegen_flags: <defaults>
</compile_context>

<pallas_src>
import math

import numpy as np

import jax
import jax.numpy as jnp
from jax import lax
from jax.experimental import pallas as pl
from jax.experimental.pallas import tpu as pltpu


C_IN, C_HID, C_PAD = 4, 8, 8          # input / hidden channels; channels padded to 8
H = W = 16
H2, W2 = H // 2, W // 2
N_TOK = H2 * W2                       # 64 tokens after 2x2 max-pool
HW = H * W                            # 256 flat pixels per (b, c) plane
TAPS = tuple((dy, dx) for dy in range(3) for dx in range(3))
SHIFTS = tuple((-((dy - 1) * W + (dx - 1))) % HW for dy, dx in TAPS)

# row layout of the packed constant slab (all starts are multiples of 8)
_MASK_ROWS = slice(0, 72)             # 9 taps x 8 sublanes of boundary masks
_SCAT_ROWS = slice(72, 136)           # (N_TOK, HW) window-broadcast 0/1 matrix
_OFF_ROW = slice(136, 137)            # (1, HW) within-window offset 0..3
CONST_ROWS = 144

# row layout of the packed weight slab / bias slab
_W1_ROWS = slice(0, 8)                # conv weights, tap-major columns
_WD_ROWS = slice(8, 12)               # deconv (flipped) weights, tap-major columns
_WQKV_ROWS = slice(16, 40)            # [Wq; Wk; Wv] in columns 0..7
_WO_ROWS = slice(40, 48)              # Wo in columns 0..7
WSLAB_ROWS, WSLAB_COLS = 48, 9 * C_PAD
_B1 = slice(0, 8)
_BQKV = slice(8, 32)
_BO = slice(32, 40)
_BD = slice(40, 44)
BSLAB_ROWS = 48


# ----------------------------- fused Pallas kernel -----------------------------

def _fused_kernel(x_ref, w_ref, b_ref, gmat_ref, c_ref, attn_ref, back_ref):
    f32 = jnp.float32

    def tap_stack(a):
        # (C_PAD, HW) -> (9*C_PAD, HW): the 9 'same'-conv taps stacked along sublanes
        # (8-aligned concat), boundary-zeroed by the resident host-built mask slab.
        parts = [a if s == 0 else pltpu.roll(a, shift=s, axis=1) for s in SHIFTS]
        return jnp.concatenate(parts, axis=0) * c_ref[_MASK_ROWS, :]

    x = x_ref[0]                                   # (C_PAD, HW); rows C_IN.. are zero

    # ---- Conv2d(4,8,3,pad=1) + bias + ReLU: one K=72 MXU dot (was 9 tiny dots) ----
    conv = jnp.dot(w_ref[_W1_ROWS, :], tap_stack(x), preferred_element_type=f32)
    conv = jnp.maximum(conv + b_ref[_B1, :], 0.0)  # (C_HID, HW), lane-dense

    # ---- MaxPool2d(2, return_indices): first-max-wins in PyTorch scan order ----
    best = conv
    code = jnp.zeros_like(conv)
    for sh, cval in ((HW - 1, 1.0), (HW - W, 2.0), (HW - W - 1, 3.0)):
        cand = pltpu.roll(conv, shift=sh, axis=1)  # values at (y,x+1), (y+1,x), (y+1,x+1)
        take = cand > best
        code = jnp.where(take, cval, code)
        best = jnp.where(take, cand, best)
    # gather window maxima AND their argmax codes with a single 0/1 matmul
    pc = jnp.dot(jnp.concatenate([best, code], axis=0), gmat_ref[...],
                 preferred_element_type=f32)       # (2*C_HID, N_TOK)
    pooled, code_p = pc[0:C_HID], pc[C_HID:2 * C_HID]

    # ---- spatial self-attention over N_TOK tokens (feature dim = C_HID) ----
    qkv = jnp.dot(w_ref[_WQKV_ROWS, 0:C_HID], pooled,
                  preferred_element_type=f32) + b_ref[_BQKV, :]         # (3*C_HID, N_TOK)
    q = qkv[0:C_HID]
    k = qkv[C_HID:2 * C_HID]
    v = qkv[2 * C_HID:3 * C_HID]
    s = jnp.dot(q.T, k, preferred_element_type=f32) * (1.0 / math.sqrt(C_HID))
    s = s - jnp.max(s, axis=-1, keepdims=True)
    p = jnp.exp(s)
    # NOTE: approx reciprocal (EUP slot) ~1e-3 rel-err; use exact divide if a tight
    # allclose against the PyTorch reference is required.
    p = p * pl.reciprocal(jnp.sum(p, axis=-1, keepdims=True), approx=True)
    # v @ p.T without materializing the (N_TOK, N_TOK) transpose (NT dot_general)
    attn = lax.dot_general(v, p, (((1,), (1,)), ((), ())),
                           preferred_element_type=f32)                  # (C_HID, N_TOK)
    out_tok = jnp.dot(w_ref[_WO_ROWS, 0:C_HID], attn,
                      preferred_element_type=f32) + b_ref[_BO, :]
    attn_ref[0] = out_tok                                               # encoder output

    # ---- MaxUnpool2d(2): one window-broadcast dot + select on the argmax code ----
    full = jnp.dot(jnp.concatenate([out_tok, code_p], axis=0), c_ref[_SCAT_ROWS, :],
                   preferred_element_type=f32)     # (2*C_HID, HW): value & code per pixel
    unpooled = jnp.where(full[C_HID:2 * C_HID] == c_ref[_OFF_ROW, :],
                         full[0:C_HID], 0.0)       # keep only the argmax position

    # ---- ConvTranspose2d(8,4,3,pad=1) == conv with flipped kernel: one K=72 dot ----
    back = jnp.dot(w_ref[_WD_ROWS, :], tap_stack(unpooled),
                   preferred_element_type=f32) + b_ref[_BD, :]
    back_ref[0] = back


# ----------------------------- host-side constants & params -----------------------------

def _build_constants():
    f32 = np.float32
    m = np.arange(HW)
    y, x = m // W, m % W
    # gather matrix: gmat[m, k] = 1 iff pixel m is the top-left of pool window k
    kk = np.arange(N_TOK)
    topleft = 2 * W * (kk // W2) + 2 * (kk % W2)
    gmat = (m[:, None] == topleft[None, :]).astype(f32)                 # (HW, N_TOK)

    const = np.zeros((CONST_ROWS, HW), f32)
    for t, (dy, dx) in enumerate(TAPS):                                 # 3x3 'same' masks
        valid = ((y + dy - 1 >= 0) & (y + dy - 1 < H) &
                 (x + dx - 1 >= 0) & (x + dx - 1 < W))
        const[C_PAD * t:C_PAD * (t + 1), :] = valid.astype(f32)[None, :]
    win = W2 * (y // 2) + x // 2                                        # owning pool window
    const[_SCAT_ROWS, :] = (kk[:, None] == win[None, :]).astype(f32)    # broadcast matrix
    const[_OFF_ROW, :] = ((y % 2) * 2 + (x % 2)).astype(f32)[None, :]   # offset map
    return gmat, const


def prepare_kernel_params(p):
    """One-time re-layout of PyTorch-style params into two slabs + 0/1 constants."""
    f32 = np.float32

    def tap_slab(w_conv, cin):       # (cout, cin, 3, 3) -> (cout, 9*C_PAD) tap-major
        cout = w_conv.shape[0]
        slab = np.zeros((cout, 9 * C_PAD), f32)
        for t, (dy, dx) in enumerate(TAPS):
            slab[:, C_PAD * t:C_PAD * t + cin] = w_conv[:, :, dy, dx]
        return slab

    w1 = np.asarray(p["conv1_w"], f32)                                  # (8, 4, 3, 3)
    # ConvTranspose2d(stride=1, pad=1, k=3) == conv with spatially flipped kernel
    wd = np.flip(np.asarray(p["deconv_w"], f32), axis=(2, 3)).transpose(1, 0, 2, 3)

    wslab = np.zeros((WSLAB_ROWS, WSLAB_COLS), f32)
    wslab[_W1_ROWS, :] = tap_slab(w1, C_IN)
    wslab[_WD_ROWS, :] = tap_slab(wd, C_HID)
    wslab[_WQKV_ROWS, 0:C_HID] = np.concatenate(
        [np.asarray(p["wq"], f32), np.asarray(p["wk"], f32), np.asarray(p["wv"], f32)],
        axis=0)
    wslab[_WO_ROWS, 0:C_HID] = np.asarray(p["wo"], f32)

    bslab = np.zeros((BSLAB_ROWS, 1), f32)
    bslab[_B1, 0] = np.asarray(p["conv1_b"], f32)
    bslab[_BQKV, 0] = np.concatenate(
        [np.asarray(p["bq"], f32), np.asarray(p["bk"], f32), np.asarray(p["bv"], f32)])
    bslab[_BO, 0] = np.asarray(p["bo"], f32)
    bslab[_BD, 0] = np.asarray(p["deconv_b"], f32)

    gmat, const = _build_constants()
    return dict(wslab=jnp.asarray(wslab), bslab=jnp.asarray(bslab),
                gmat=jnp.asarray(gmat), const=jnp.asarray(const))


# ----------------------------- wrapper -----------------------------

def _resident_spec(shape):
    return pl.BlockSpec(shape, lambda b: (0,) * len(shape))


def self_attn_model(x, kp):
    """x: (B, 4, 16, 16) NCHW -> (attn_output (B,8,8,8), back_output (B,4,16,16))."""
    B = x.shape[0]
    x2d = x.reshape(B, C_IN, HW).astype(jnp.float32)        # free row-major reshape
    # pad channels 4 -> 8 so every conv tap is a full 8-sublane tile (aligned concat)
    x2d = jnp.pad(x2d, ((0, 0), (0, C_PAD - C_IN), (0, 0)))

    attn_tok, back_flat = pl.pallas_call(
        _fused_kernel,
        out_shape=(
            jax.ShapeDtypeStruct((B, C_HID, N_TOK), jnp.float32),
            jax.ShapeDtypeStruct((B, C_IN, HW), jnp.float32),
        ),
        grid=(B,),
        in_specs=[
            pl.BlockSpec((1, C_PAD, HW), lambda b: (b, 0, 0)),
            _resident_spec((WSLAB_ROWS, WSLAB_COLS)),
            _resident_spec((BSLAB_ROWS, 1)),
            _resident_spec((HW, N_TOK)),
            _resident_spec((CONST_ROWS, HW)),
        ],
        out_specs=(
            pl.BlockSpec((1, C_HID, N_TOK), lambda b: (b, 0, 0)),
            pl.BlockSpec((1, C_IN, HW), lambda b: (b, 0, 0)),
        ),
        compiler_params=pltpu.CompilerParams(dimension_semantics=("parallel",)),
    )(x2d, kp["wslab"], kp["bslab"], kp["gmat"], kp["const"])

    attn_output = attn_tok.reshape(B, C_HID, H2, W2)         # free reshape (row-major)
    back_output = back_flat.reshape(B, C_IN, H, W)           # free reshape (row-major)
    return attn_output, back_output


# ----------------------------- params -----------------------------

def init_params(key):
    ks = jax.random.split(key, 12)

    def normal(k, shape, scale):
        return (scale * jax.random.normal(k, shape)).astype(jnp.float32)

    return {
        "conv1_w": normal(ks[0], (C_HID, C_IN, 3, 3), 0.1),    # Conv2d(4,8,3,pad=1)
        "conv1_b": normal(ks[1], (C_HID,), 0.1),
        "wq": normal(ks[2], (C_HID, C_HID), 0.2),              # Linear(8,8) (out,in)
        "bq": normal(ks[3], (C_HID,), 0.1),
        "wk": normal(ks[4], (C_HID, C_HID), 0.2),
        "bk": normal(ks[5], (C_HID,), 0.1),
        "wv": normal(ks[6], (C_HID, C_HID), 0.2),
        "bv": normal(ks[7], (C_HID,), 0.1),
        "wo": normal(ks[8], (C_HID, C_HID), 0.2),
        "bo": normal(ks[9], (C_HID,), 0.1),
        "deconv_w": normal(ks[10], (C_HID, C_IN, 3, 3), 0.1),  # ConvTranspose2d (in,out,kh,kw)
        "deconv_b": normal(ks[11], (C_IN,), 0.1),
    }


# ----------------------------- main -----------------------------

if __name__ == "__main__":
    key = jax.random.PRNGKey(0)
    k_x, k_p = jax.random.split(key)
    x = jax.random.normal(k_x, (2, 4, 16, 16), dtype=jnp.float32)   # NCHW
    params = init_params(k_p)
    kparams = prepare_kernel_params(params)   # one-time weight/constant re-layout

    fwd = jax.jit(self_attn_model)
    attn_out, back_out = fwd(x, kparams)
    jax.block_until_ready((attn_out, back_out))

    assert attn_out.shape == (2, 8, 8, 8)       # (B, C_hid, H/2, W/2)
    assert back_out.shape == (2, 4, 16, 16)     # reconstruction, same as input
    assert jnp.all(jnp.isfinite(attn_out)) and jnp.all(jnp.isfinite(back_out))
    print("KERNEL_OK")
</pallas_src>

<mosaic_0001>
module attributes {stable_mosaic.version = 11 : i64} {
  func.func @_fused_kernel(%arg0: i32, %arg1: memref<1x8x256xf32, #tpu.memory_space<vmem>>, %arg2: memref<48x72xf32, #tpu.memory_space<vmem>>, %arg3: memref<48x1xf32, #tpu.memory_space<vmem>>, %arg4: memref<256x64xf32, #tpu.memory_space<vmem>>, %arg5: memref<144x256xf32, #tpu.memory_space<vmem>>, %arg6: memref<1x8x64xf32, #tpu.memory_space<vmem>>, %arg7: memref<1x4x256xf32, #tpu.memory_space<vmem>>) attributes {dimension_semantics = [#tpu.dimension_semantics<parallel>], iteration_bounds = array<i64: 2>, scalar_prefetch = 0 : i64, scratch_operands = 0 : i64, tpu.core_type = #tpu.core_type<tc>, window_params = [{transform_indices = @transform_0, window_bounds = array<i64: 1, 8, 256>}, {pipeline_mode = #tpu.pipeline_mode<synchronous>, transform_indices = @transform_1, window_bounds = array<i64: 48, 72>}, {pipeline_mode = #tpu.pipeline_mode<synchronous>, transform_indices = @transform_2, window_bounds = array<i64: 48, 1>}, {pipeline_mode = #tpu.pipeline_mode<synchronous>, transform_indices = @transform_3, window_bounds = array<i64: 256, 64>}, {pipeline_mode = #tpu.pipeline_mode<synchronous>, transform_indices = @transform_4, window_bounds = array<i64: 144, 256>}, {transform_indices = @transform_5, window_bounds = array<i64: 1, 8, 64>}, {transform_indices = @transform_6, window_bounds = array<i64: 1, 4, 256>}]} {
    %c0 = arith.constant 0 : index
    %c0_0 = arith.constant 0 : index
    %c0_1 = arith.constant 0 : index
    %0 = vector.load %arg1[%c0, %c0_0, %c0_1] : memref<1x8x256xf32, #tpu.memory_space<vmem>>, vector<1x8x256xf32>
    %1 = vector.shape_cast %0 : vector<1x8x256xf32> to vector<8x256xf32>
    %c0_2 = arith.constant 0 : index
    %c0_3 = arith.constant 0 : index
    %2 = vector.load %arg2[%c0_2, %c0_3] : memref<48x72xf32, #tpu.memory_space<vmem>>, vector<8x72xf32>
    %c17_i32 = arith.constant 17 : i32
    %3 = tpu.dynamic_rotate %1 by %c17_i32 dim 1 : vector<8x256xf32>, i32 -> vector<8x256xf32>
    %c16_i32 = arith.constant 16 : i32
    %4 = tpu.dynamic_rotate %1 by %c16_i32 dim 1 : vector<8x256xf32>, i32 -> vector<8x256xf32>
    %c15_i32 = arith.constant 15 : i32
    %5 = tpu.dynamic_rotate %1 by %c15_i32 dim 1 : vector<8x256xf32>, i32 -> vector<8x256xf32>
    %c1_i32 = arith.constant 1 : i32
    %6 = tpu.dynamic_rotate %1 by %c1_i32 dim 1 : vector<8x256xf32>, i32 -> vector<8x256xf32>
    %c255_i32 = arith.constant 255 : i32
    %7 = tpu.dynamic_rotate %1 by %c255_i32 dim 1 : vector<8x256xf32>, i32 -> vector<8x256xf32>
    %c241_i32 = arith.constant 241 : i32
    %8 = tpu.dynamic_rotate %1 by %c241_i32 dim 1 : vector<8x256xf32>, i32 -> vector<8x256xf32>
    %c240_i32 = arith.constant 240 : i32
    %9 = tpu.dynamic_rotate %1 by %c240_i32 dim 1 : vector<8x256xf32>, i32 -> vector<8x256xf32>
    %c239_i32 = arith.constant 239 : i32
    %10 = tpu.dynamic_rotate %1 by %c239_i32 dim 1 : vector<8x256xf32>, i32 -> vector<8x256xf32>
    %11 = tpu.concatenate %3, %4, %5, %6, %1, %7, %8, %9, %10 in 0 : vector<8x256xf32>, vector<8x256xf32>, vector<8x256xf32>, vector<8x256xf32>, vector<8x256xf32>, vector<8x256xf32>, vector<8x256xf32>, vector<8x256xf32>, vector<8x256xf32> -> vector<72x256xf32>
    %c0_4 = arith.constant 0 : index
    %c0_5 = arith.constant 0 : index
    %12 = vector.load %arg5[%c0_4, %c0_5] : memref<144x256xf32, #tpu.memory_space<vmem>>, vector<72x256xf32>
    %13 = arith.mulf %11, %12 : vector<72x256xf32>
    %cst = arith.constant dense<0.000000e+00> : vector<8x256xf32>
    %14 = tpu.matmul %2, %13, %cst {dimension_numbers = #tpu.dot_dimension_numbers<[1], [0], [0], [1], [0, 0, 1, 1], [], []>} : vector<8x72xf32>, vector<72x256xf32>, vector<8x256xf32> -> vector<8x256xf32>
    %c0_6 = arith.constant 0 : index
    %c0_7 = arith.constant 0 : index
    %15 = vector.load %arg3[%c0_6, %c0_7] : memref<48x1xf32, #tpu.memory_space<vmem>>, vector<8x1xf32>
    %16 = vector.broadcast %15 : vector<8x1xf32> to vector<8x256xf32>
    %17 = arith.addf %14, %16 : vector<8x256xf32>
    %cst_8 = arith.constant 0.000000e+00 : f32
    %18 = vector.broadcast %cst_8 : f32 to vector<8x256xf32>
    %19 = arith.maximumf %17, %18 : vector<8x256xf32>
    %cst_9 = arith.constant 0.000000e+00 : f32
    %20 = vector.broadcast %cst_9 : f32 to vector<8x256xf32>
    %c255_i32_10 = arith.constant 255 : i32
    %21 = tpu.dynamic_rotate %19 by %c255_i32_10 dim 1 : vector<8x256xf32>, i32 -> vector<8x256xf32>
    %22 = arith.cmpf ogt, %21, %19 : vector<8x256xf32>
    %cst_11 = arith.constant 1.000000e+00 : f32
    %23 = vector.broadcast %cst_11 : f32 to vector<8x256xf32>
    %24 = arith.select %22, %23, %20 : vector<8x256xi1>, vector<8x256xf32>
    %25 = arith.select %22, %21, %19 : vector<8x256xi1>, vector<8x256xf32>
    %c240_i32_12 = arith.constant 240 : i32
    %26 = tpu.dynamic_rotate %19 by %c240_i32_12 dim 1 : vector<8x256xf32>, i32 -> vector<8x256xf32>
    %27 = arith.cmpf ogt, %26, %25 : vector<8x256xf32>
    %cst_13 = arith.constant 2.000000e+00 : f32
    %28 = vector.broadcast %cst_13 : f32 to vector<8x256xf32>
    %29 = arith.select %27, %28, %24 : vector<8x256xi1>, vector<8x256xf32>
    %30 = arith.select %27, %26, %25 : vector<8x256xi1>, vector<8x256xf32>
    %c239_i32_14 = arith.constant 239 : i32
    %31 = tpu.dynamic_rotate %19 by %c239_i32_14 dim 1 : vector<8x256xf32>, i32 -> vector<8x256xf32>
    %32 = arith.cmpf ogt, %31, %30 : vector<8x256xf32>
    %cst_15 = arith.constant 3.000000e+00 : f32
    %33 = vector.broadcast %cst_15 : f32 to vector<8x256xf32>
    %34 = arith.select %32, %33, %29 : vector<8x256xi1>, vector<8x256xf32>
    %35 = arith.select %32, %31, %30 : vector<8x256xi1>, vector<8x256xf32>
    %36 = tpu.concatenate %35, %34 in 0 : vector<8x256xf32>, vector<8x256xf32> -> vector<16x256xf32>
    %c0_16 = arith.constant 0 : index
    %c0_17 = arith.constant 0 : index
    %37 = vector.load %arg4[%c0_16, %c0_17] : memref<256x64xf32, #tpu.memory_space<vmem>>, vector<256x64xf32>
    %cst_18 = arith.constant dense<0.000000e+00> : vector<16x64xf32>
    %38 = tpu.matmul %36, %37, %cst_18 {dimension_numbers = #tpu.dot_dimension_numbers<[1], [0], [0], [1], [0, 0, 1, 1], [], []>} : vector<16x256xf32>, vector<256x64xf32>, vector<16x64xf32> -> vector<16x64xf32>
    %39 = vector.extract_strided_slice %38 {offsets = [0, 0], sizes = [8, 64], strides = [1, 1]} : vector<16x64xf32> to vector<8x64xf32>
    %40 = vector.extract_strided_slice %38 {offsets = [8, 0], sizes = [8, 64], strides = [1, 1]} : vector<16x64xf32> to vector<8x64xf32>
    %c16 = arith.constant 16 : index
    %c0_19 = arith.constant 0 : index
    %41 = vector.load %arg2[%c16, %c0_19] : memref<48x72xf32, #tpu.memory_space<vmem>>, vector<24x8xf32>
    %cst_20 = arith.constant dense<0.000000e+00> : vector<24x64xf32>
    %42 = tpu.matmul %41, %39, %cst_20 {dimension_numbers = #tpu.dot_dimension_numbers<[1], [0], [0], [1], [0, 0, 1, 1], [], []>} : vector<24x8xf32>, vector<8x64xf32>, vector<24x64xf32> -> vector<24x64xf32>
    %c8 = arith.constant 8 : index
    %c0_21 = arith.constant 0 : index
    %43 = vector.load %arg3[%c8, %c0_21] : memref<48x1xf32, #tpu.memory_space<vmem>>, vector<24x1xf32>
    %44 = vector.broadcast %43 : vector<24x1xf32> to vector<24x64xf32>
    %45 = arith.addf %42, %44 : vector<24x64xf32>
    %46 = vector.extract_strided_slice %45 {offsets = [0, 0], sizes = [8, 64], strides = [1, 1]} : vector<24x64xf32> to vector<8x64xf32>
    %47 = vector.extract_strided_slice %45 {offsets = [8, 0], sizes = [8, 64], strides = [1, 1]} : vector<24x64xf32> to vector<8x64xf32>
    %48 = vector.extract_strided_slice %45 {offsets = [16, 0], sizes = [8, 64], strides = [1, 1]} : vector<24x64xf32> to vector<8x64xf32>
    %49 = tpu.transpose %46, [1, 0] : vector<8x64xf32> -> vector<64x8xf32>
    %cst_22 = arith.constant dense<0.000000e+00> : vector<64x64xf32>
    %50 = tpu.matmul %49, %47, %cst_22 {dimension_numbers = #tpu.dot_dimension_numbers<[1], [0], [0], [1], [0, 0, 1, 1], [], []>} : vector<64x8xf32>, vector<8x64xf32>, vector<64x64xf32> -> vector<64x64xf32>
    %cst_23 = arith.constant 0.353553385 : f32
    %51 = vector.broadcast %cst_23 : f32 to vector<64x64xf32>
    %52 = arith.mulf %50, %51 : vector<64x64xf32>
    %cst_24 = arith.constant dense<0xFF800000> : vector<64xf32>
    %53 = vector.multi_reduction <maximumf>, %52, %cst_24 [1] : vector<64x64xf32> to vector<64xf32>
    %54 = vector.shape_cast %53 : vector<64xf32> to vector<64x1xf32>
    %55 = vector.broadcast %54 : vector<64x1xf32> to vector<64x64xf32>
    %56 = arith.subf %52, %55 : vector<64x64xf32>
    %57 = math.exp %56 : vector<64x64xf32>
    %cst_25 = arith.constant dense<0.000000e+00> : vector<64xf32>
    %58 = vector.multi_reduction <add>, %57, %cst_25 [1] : vector<64x64xf32> to vector<64xf32>
    %59 = vector.shape_cast %58 : vector<64xf32> to vector<64x1xf32>
    %60 = tpu.reciprocal %59 {approx = true} : vector<64x1xf32> -> vector<64x1xf32>
    %61 = vector.broadcast %60 : vector<64x1xf32> to vector<64x64xf32>
    %62 = arith.mulf %57, %61 : vector<64x64xf32>
    %cst_26 = arith.constant dense<0.000000e+00> : vector<8x64xf32>
    %63 = tpu.matmul %48, %62, %cst_26 {dimension_numbers = #tpu.dot_dimension_numbers<[1], [1], [0], [0], [0, 0, 1, 0], [], []>} : vector<8x64xf32>, vector<64x64xf32>, vector<8x64xf32> -> vector<8x64xf32>
    %c40 = arith.constant 40 : index
    %c0_27 = arith.constant 0 : index
    %64 = vector.load %arg2[%c40, %c0_27] : memref<48x72xf32, #tpu.memory_space<vmem>>, vector<8x8xf32>
    %cst_28 = arith.constant dense<0.000000e+00> : vector<8x64xf32>
    %65 = tpu.matmul %64, %63, %cst_28 {dimension_numbers = #tpu.dot_dimension_numbers<[1], [0], [0], [1], [0, 0, 1, 1], [], []>} : vector<8x8xf32>, vector<8x64xf32>, vector<8x64xf32> -> vector<8x64xf32>
    %c32 = arith.constant 32 : index
    %c0_29 = arith.constant 0 : index
    %66 = vector.load %arg3[%c32, %c0_29] : memref<48x1xf32, #tpu.memory_space<vmem>>, vector<8x1xf32>
    %67 = vector.broadcast %66 : vector<8x1xf32> to vector<8x64xf32>
    %68 = arith.addf %65, %67 : vector<8x64xf32>
    %c0_30 = arith.constant 0 : index
    %c0_31 = arith.constant 0 : index
    %c0_32 = arith.constant 0 : index
    %69 = vector.load %arg6[%c0_30, %c0_31, %c0_32] : memref<1x8x64xf32, #tpu.memory_space<vmem>>, vector<1x8x64xf32>
    %70 = vector.shape_cast %69 : vector<1x8x64xf32> to vector<8x64xf32>
    %71 = vector.shape_cast %68 : vector<8x64xf32> to vector<1x8x64xf32>
    tpu.vector_store %arg6[%c0_30, %c0_31, %c0_32], %71 {strides = array<i32>} : memref<1x8x64xf32, #tpu.memory_space<vmem>>, vector<1x8x64xf32>,
    %72 = tpu.concatenate %68, %40 in 0 : vector<8x64xf32>, vector<8x64xf32> -> vector<16x64xf32>
    %c72 = arith.constant 72 : index
    %c0_33 = arith.constant 0 : index
    %73 = vector.load %arg5[%c72, %c0_33] : memref<144x256xf32, #tpu.memory_space<vmem>>, vector<64x256xf32>
    %cst_34 = arith.constant dense<0.000000e+00> : vector<16x256xf32>
    %74 = tpu.matmul %72, %73, %cst_34 {dimension_numbers = #tpu.dot_dimension_numbers<[1], [0], [0], [1], [0, 0, 1, 1], [], []>} : vector<16x64xf32>, vector<64x256xf32>, vector<16x256xf32> -> vector<16x256xf32>
    %75 = vector.extract_strided_slice %74 {offsets = [8, 0], sizes = [8, 256], strides = [1, 1]} : vector<16x256xf32> to vector<8x256xf32>
    %c136 = arith.constant 136 : index
    %c0_35 = arith.constant 0 : index
    %76 = vector.load %arg5[%c136, %c0_35] : memref<144x256xf32, #tpu.memory_space<vmem>>, vector<1x256xf32>
    %77 = vector.broadcast %76 : vector<1x256xf32> to vector<8x256xf32>
    %78 = arith.cmpf oeq, %75, %77 : vector<8x256xf32>
    %79 = vector.extract_strided_slice %74 {offsets = [0, 0], sizes = [8, 256], strides = [1, 1]} : vector<16x256xf32> to vector<8x256xf32>
    %cst_36 = arith.constant 0.000000e+00 : f32
    %80 = vector.broadcast %cst_36 : f32 to vector<8x256xf32>
    %81 = arith.select %78, %79, %80 : vector<8x256xi1>, vector<8x256xf32>
    %c8_37 = arith.constant 8 : index
    %c0_38 = arith.constant 0 : index
    %82 = vector.load %arg2[%c8_37, %c0_38] : memref<48x72xf32, #tpu.memory_space<vmem>>, vector<4x72xf32>
    %c17_i32_39 = arith.constant 17 : i32
    %83 = tpu.dynamic_rotate %81 by %c17_i32_39 dim 1 : vector<8x256xf32>, i32 -> vector<8x256xf32>
    %c16_i32_40 = arith.constant 16 : i32
    %84 = tpu.dynamic_rotate %81 by %c16_i32_40 dim 1 : vector<8x256xf32>, i32 -> vector<8x256xf32>
    %c15_i32_41 = arith.constant 15 : i32
    %85 = tpu.dynamic_rotate %81 by %c15_i32_41 dim 1 : vector<8x256xf32>, i32 -> vector<8x256xf32>
    %c1_i32_42 = arith.constant 1 : i32
    %86 = tpu.dynamic_rotate %81 by %c1_i32_42 dim 1 : vector<8x256xf32>, i32 -> vector<8x256xf32>
    %c255_i32_43 = arith.constant 255 : i32
    %87 = tpu.dynamic_rotate %81 by %c255_i32_43 dim 1 : vector<8x256xf32>, i32 -> vector<8x256xf32>
    %c241_i32_44 = arith.constant 241 : i32
    %88 = tpu.dynamic_rotate %81 by %c241_i32_44 dim 1 : vector<8x256xf32>, i32 -> vector<8x256xf32>
    %c240_i32_45 = arith.constant 240 : i32
    %89 = tpu.dynamic_rotate %81 by %c240_i32_45 dim 1 : vector<8x256xf32>, i32 -> vector<8x256xf32>
    %c239_i32_46 = arith.constant 239 : i32
    %90 = tpu.dynamic_rotate %81 by %c239_i32_46 dim 1 : vector<8x256xf32>, i32 -> vector<8x256xf32>
    %91 = tpu.concatenate %83, %84, %85, %86, %81, %87, %88, %89, %90 in 0 : vector<8x256xf32>, vector<8x256xf32>, vector<8x256xf32>, vector<8x256xf32>, vector<8x256xf32>, vector<8x256xf32>, vector<8x256xf32>, vector<8x256xf32>, vector<8x256xf32> -> vector<72x256xf32>
    %c0_47 = arith.constant 0 : index
    %c0_48 = arith.constant 0 : index
    %92 = vector.load %arg5[%c0_47, %c0_48] : memref<144x256xf32, #tpu.memory_space<vmem>>, vector<72x256xf32>
    %93 = arith.mulf %91, %92 : vector<72x256xf32>
    %cst_49 = arith.constant dense<0.000000e+00> : vector<4x256xf32>
    %94 = tpu.matmul %82, %93, %cst_49 {dimension_numbers = #tpu.dot_dimension_numbers<[1], [0], [0], [1], [0, 0, 1, 1], [], []>} : vector<4x72xf32>, vector<72x256xf32>, vector<4x256xf32> -> vector<4x256xf32>
    %c40_50 = arith.constant 40 : index
    %c0_51 = arith.constant 0 : index
    %95 = vector.load %arg3[%c40_50, %c0_51] : memref<48x1xf32, #tpu.memory_space<vmem>>, vector<4x1xf32>
    %96 = vector.broadcast %95 : vector<4x1xf32> to vector<4x256xf32>
    %97 = arith.addf %94, %96 : vector<4x256xf32>
    %c0_52 = arith.constant 0 : index
    %c0_53 = arith.constant 0 : index
    %c0_54 = arith.constant 0 : index
    %98 = vector.load %arg7[%c0_52, %c0_53, %c0_54] : memref<1x4x256xf32, #tpu.memory_space<vmem>>, vector<1x4x256xf32>
    %99 = vector.shape_cast %98 : vector<1x4x256xf32> to vector<4x256xf32>
    %100 = vector.shape_cast %97 : vector<4x256xf32> to vector<1x4x256xf32>
    tpu.vector_store %arg7[%c0_52, %c0_53, %c0_54], %100 {strides = array<i32>} : memref<1x4x256xf32, #tpu.memory_space<vmem>>, vector<1x4x256xf32>,
    return
  }
  func.func @transform_0(%arg0: i32) -> (i32, i32, i32) {
    %c0_i32 = arith.constant 0 : i32
    %c0_i32_0 = arith.constant 0 : i32
    %c0_i32_1 = arith.constant 0 : i32
    return %arg0, %c0_i32, %c0_i32_0 : i32, i32, i32
  }
  func.func @transform_1(%arg0: i32) -> (i32, i32) {
    %c0_i32 = arith.constant 0 : i32
    %c0_i32_0 = arith.constant 0 : i32
    %c0_i32_1 = arith.constant 0 : i32
    return %c0_i32, %c0_i32_0 : i32, i32
  }
  func.func @transform_2(%arg0: i32) -> (i32, i32) {
    %c0_i32 = arith.constant 0 : i32
    %c0_i32_0 = arith.constant 0 : i32
    %c0_i32_1 = arith.constant 0 : i32
    return %c0_i32, %c0_i32_0 : i32, i32
  }
  func.func @transform_3(%arg0: i32) -> (i32, i32) {
    %c0_i32 = arith.constant 0 : i32
    %c0_i32_0 = arith.constant 0 : i32
    %c0_i32_1 = arith.constant 0 : i32
    return %c0_i32, %c0_i32_0 : i32, i32
  }
  func.func @transform_4(%arg0: i32) -> (i32, i32) {
    %c0_i32 = arith.constant 0 : i32
    %c0_i32_0 = arith.constant 0 : i32
    %c0_i32_1 = arith.constant 0 : i32
    return %c0_i32, %c0_i32_0 : i32, i32
  }
  func.func @transform_5(%arg0: i32) -> (i32, i32, i32) {
    %c0_i32 = arith.constant 0 : i32
    %c0_i32_0 = arith.constant 0 : i32
    %c0_i32_1 = arith.constant 0 : i32
    return %arg0, %c0_i32, %c0_i32_0 : i32, i32, i32
  }
  func.func @transform_6(%arg0: i32) -> (i32, i32, i32) {
    %c0_i32 = arith.constant 0 : i32
    %c0_i32_0 = arith.constant 0 : i32
    %c0_i32_1 = arith.constant 0 : i32
    return %arg0, %c0_i32, %c0_i32_0 : i32, i32, i32
  }
}

</mosaic_0001>

<bundles_post_ra>
// kernel: self_attn_model.1
= control target key start
LH: loop header
LB: loop body
LE: loop exit
PB: predicated region body
PF: predicated region fallthrough
CT: control target
= control target key end

     0   :  { %s1861_s21 = smov 0   ;;  %s2424_s0 = inlined_call_operand.vmem [shape: f32[2,8,256], index: 0, kind: input, shape index: {}]   ;;  %s2425_s1 = inlined_call_operand.vmem [shape: f32[48,72], index: 1, kind: input, shape index: {}]   ;;  %s2426_s2 = inlined_call_operand.vmem [shape: f32[48,1], index: 2, kind: input, shape index: {}]   ;;  %s2427_s3 = inlined_call_operand.vmem [shape: f32[256,64], index: 3, kind: input, shape index: {}]   ;;  %s2428_s4 = inlined_call_operand.vmem [shape: f32[144,256], index: 4, kind: input, shape index: {}]   ;;  %s2429_s5 = inlined_call_operand.vmem [shape: f32[2,8,64], index: 5, kind: output, shape index: {0}]   ;;  %s2430_s6 = inlined_call_operand.vmem [shape: f32[2,4,256], index: 6, kind: output, shape index: {1}]  }
   0x1 LB: > { %s1505_s22 = sadd.s32 4294967295, %s1812_s21   ;;  %p1509_p0 = scmp.ge.s32.totalorder %s1812_s21, 1  ;;  %s1812_s21 = sphi %s1861_s21, %s17_s21  }
   0x2   : > { %p215_p1 = scmp.lt.s32.totalorder %s1812_s21, 3 }
   0x4   : > { %p216_p2 = pnand %p1509_p0, %p215_p1 }
   0x5   : > { %p249_p3 = scmp.lt.s32.totalorder (!%p216_p2), %s1505_s22, 1  ;;  %s1814_s27 = smov (!%p216_p2), 16   ;;  %v1820_v2 = vmov (!%p216_p2), 0.0   ;;  %v1821_v3 = vmov (!%p216_p2), 0   ;;  %v360_v4 = vld [vmem:[%s2426_s2] sm:$0xff] (!%p216_p2)  ;;  %v270_v5 = vlaneseq (!%p216_p2)  ;;  %v1922_v9 = vld [vmem:[%s2428_s4 + $0x10] sm:$0xff] (!%p216_p2) }
   0x6   : > { %219 = sbr.rel (%p216_p2) target bundleno = 2668 (0xa6c), region = 40  ;;  %s1815_s28 = smov (!%p216_p2), 17   ;;  %434 = vmatprep.mubr.f32.mxu0 (!%p216_p2), %v1820_v2  ;;  %1772 = vset.pattern.permute.xlu0 (!%p216_p2), %v1821_v3  ;;  %v1928_v10 = vld [vmem:[%s2428_s4] sm:$0xff] (!%p216_p2)  ;;  %v1933_v11 = vld [vmem:[%s2428_s4 + $0x8] sm:$0xff] (!%p216_p2)  ;;  %v1938_v12 = vld [vmem:[%s2428_s4 + $0x18] sm:$0xff] (!%p216_p2)  ;;  %vm366_vm8 = vcmask (!%p216_p2), 588800  }
   0x7   : > { %s1816_s29 = smov (!%p216_p2), 15   ;;  %s1817_s30 = smov (!%p216_p2), 1   ;;  %1773 = vset.pattern.permute.xlu1 (!%p216_p2), %v1821_v3  ;;  %v1916_v6 = vand.u32 (!%p216_p2), 127, %v270_v5  ;;  %v1956_v27 = vld [vmem:[%s2428_s4 + $0x20] sm:$0xff] (!%p216_p2)  ;;  %v1962_v28 = vld [vmem:[%s2428_s4 + $0x28] sm:$0xff] (!%p216_p2)  ;;  %v1971_v31 = vld [vmem:[%s2428_s4 + $0x30] sm:$0xff] (!%p216_p2) }
   0x8   : > { %s1818_s7 = smov (!%p216_p2), 127   ;;  %s1819_s8 = smov (!%p216_p2), 113   ;;  %v1976_v32 = vld [vmem:[%s2428_s4 + $0x38] sm:$0xff] (!%p216_p2)  ;;  %v1986_v37 = vld [vmem:[%s2428_s4 + $0x48] sm:$0xff] (!%p216_p2)  ;;  %v1991_v38 = vld [vmem:[%s2428_s4 + $0x40] sm:$0xff] (!%p216_p2)  ;;  %vm1824_vm15 = vmmov (!%p216_p2), 0  }
   0x9   : > { %s1822_s9 = smov (!%p216_p2), 112   ;;  %s1823_s10 = smov (!%p216_p2), 111   ;;  %vm279_vm0 = vcmp.lt.s32.totalorder (!%p216_p2), %v1916_v6, 16  ;;  %vm272_vm1 = vcmp.lt.s32.totalorder (!%p216_p2), %v1916_v6, 17  ;;  %vm286_vm2 = vcmp.lt.s32.totalorder (!%p216_p2), %v1916_v6, 15  ;;  %vm293_vm3 = vcmp.lt.s32.totalorder (!%p216_p2), %v1916_v6, 1 }
   0xa   : > { %vm300_vm4 = vcmp.lt.s32.totalorder (!%p216_p2), %v1916_v6, 127  ;;  %v2000_v43 = vld [vmem:[%s2428_s4 + $0x50] sm:$0xff] (!%p216_p2)  ;;  %v2005_v44 = vld [vmem:[%s2428_s4 + $0x58] sm:$0xff] (!%p216_p2)  ;;  %vm307_vm5 = vcmp.lt.s32.totalorder (!%p216_p2), %v1916_v6, 113  ;;  %v2021_v59 = vld [vmem:[%s2428_s4 + $0x60] sm:$0xff] (!%p216_p2)  ;;  %vm314_vm6 = vcmp.lt.s32.totalorder (!%p216_p2), %v1916_v6, 112 }
   0xb   : > { %v2027_v60 = vld [vmem:[%s2428_s4 + $0x68] sm:$0xff] (!%p216_p2)  ;;  %v2036_v63 = vld [vmem:[%s2428_s4 + $0x70] sm:$0xff] (!%p216_p2)  ;;  %vm321_vm7 = vcmp.lt.s32.totalorder (!%p216_p2), %v1916_v6, 111 }
   0xd   : > { %s2434_s22 = smov (!%p249_p3, %s1505_s22), 1 }
   0xe   : > { %s1543_s23 = sshll.u32 %s2434_s22, 4  ;;  %s1512_s25 = sshll.u32 %s2434_s22, 3 }
   0xf   : > { %s253_s26 = scalar_lea.vmem %s2424_s0, %s1543_s23  ;;  %s257_s12 = scalar_lea.vmem %s2429_s5, %s1512_s25 }
  0x10   : > { %v1875_v0 = vld [vmem:[%s253_s26] sm:$0xff]  ;;  %v1881_v1 = vld [vmem:[%s253_s26 + $0x8] sm:$0xff] }
  0x11   : > { %275 = vrot.lane.b32.xlu1 %v1875_v0, %s1814_s27  ;;  %266 = vrot.lane.b32.xlu0 %v1875_v0, %s1815_s28  ;;  %v351_v49 = vmul.f32 %v1986_v37, %v1881_v1  ;;  %v350_v50 = vmul.f32 %v1991_v38, %v1875_v0 }
  0x15   : > { %277 = vrot.lane.b32.xlu1 %v1881_v1, %s1814_s27  ;;  %268 = vrot.lane.b32.xlu0 %v1881_v1, %s1815_s28 }
  0x19   : > { %284 = vrot.lane.b32.xlu1 %v1881_v1, %s1816_s29  ;;  %282 = vrot.lane.b32.xlu0 %v1875_v0, %s1816_s29 }
  0x1d   : > { %291 = vrot.lane.b32.xlu1 %v1881_v1, %s1817_s30  ;;  %289 = vrot.lane.b32.xlu0 %v1875_v0, %s1817_s30 }
  0x21   : > { %298 = vrot.lane.b32.xlu1 %v1881_v1, %s1818_s7  ;;  %296 = vrot.lane.b32.xlu0 %v1875_v0, %s1818_s7 }
  0x25   : > { %305 = vrot.lane.b32.xlu1 %v1881_v1, %s1819_s8  ;;  %303 = vrot.lane.b32.xlu0 %v1875_v0, %s1819_s8 }
  0x29   : > { %312 = vrot.lane.b32.xlu1 %v1881_v1, %s1822_s9  ;;  %310 = vrot.lane.b32.xlu0 %v1875_v0, %s1822_s9 }
  0x2d   : > { %319 = vrot.lane.b32.xlu1 %v1881_v1, %s1823_s10  ;;  %317 = vrot.lane.b32.xlu0 %v1875_v0, %s1823_s10  ;;  %v2041_v0 = vld [vmem:[%s2428_s4 + $0x78] sm:$0xff] }
  0x31   : > { %363 = vperm.xlu0 %1772, %v360_v4  }
  0x83   : > { %v276_v7 = vpop.permute.xlu1 %275  ;;  %v267_v8 = vpop.permute.xlu0 %266 }
  0x87   : > { %v278_v13 = vpop.permute.xlu1 %277  ;;  %v269_v14 = vpop.permute.xlu0 %268 }
  0x88   : > { %v280_v15 = vsel %vm279_vm0, %v276_v7, %v278_v13  ;;  %v281_v16 = vsel %vm279_vm0, %v278_v13, %v276_v7  ;;  %v273_v17 = vsel %vm272_vm1, %v267_v8, %v269_v14  ;;  %v274_v18 = vsel %vm272_vm1, %v269_v14, %v267_v8 }
  0x89   : > { %v344_v19 = vmul.f32 %v1922_v9, %v281_v16  ;;  %v342_v20 = vmul.f32 %v1928_v10, %v274_v18  ;;  %v343_v21 = vmul.f32 %v1933_v11, %v273_v17  ;;  %v345_v22 = vmul.f32 %v1938_v12, %v280_v15  ;;  %v2055_v16 = vld [vmem:[%s2428_s4 + $0x88] sm:$0xff]  ;;  %v2060_v18 = vld [vmem:[%s2428_s4 + $0x80] sm:$0xff] }
  0x8b   : > { %v285_v23 = vpop.permute.xlu1 %284  ;;  %v283_v24 = vpop.permute.xlu0 %282  ;;  %v1656_v25 = vpack.c.bf16 %v345_v22, %v343_v21  ;;  %v1658_v26 = vpack.c.bf16 %v344_v19, %v342_v20 }
  0x8c   : > { %v287_v29 = vsel %vm286_vm2, %v283_v24, %v285_v23  ;;  %v288_v30 = vsel %vm286_vm2, %v285_v23, %v283_v24 }
  0x8d   : > { %1657 = vmatprep.subr.bf16.mxu0 %v1656_v25  ;;  %v346_v39 = vmul.f32 %v1956_v27, %v288_v30  ;;  %v347_v40 = vmul.f32 %v1962_v28, %v287_v29  ;;  %v495_v29 = vld [vmem:[%s2427_s3 + $0x80] sm:$0xff]  ;;  %v496_v30 = vld [vmem:[%s2427_s3 + $0x88] sm:$0xff] }
  0x8e   : > { %1659 = vmatpush1.bf16.msra.mxu0 %v1658_v26  ;;  %v265_v26 = vld [vmem:[%s2425_s1] sm:$0xff] }
  0x8f   : > { %v292_v33 = vpop.permute.xlu1 %291  ;;  %v290_v34 = vpop.permute.xlu0 %289 }
  0x90   : > { %v294_v35 = vsel %vm293_vm3, %v290_v34, %v292_v33  ;;  %v295_v36 = vsel %vm293_vm3, %v292_v33, %v290_v34  ;;  %v479_v33 = vld [vmem:[%s2427_s3] sm:$0xff]  ;;  %v1672_v34 = vpack.c.bf16 %v496_v30, %v495_v29 }
  0x91   : > { %v348_v41 = vmul.f32 %v1971_v31, %v295_v36  ;;  %v349_v42 = vmul.f32 %v1976_v32, %v294_v35  ;;  %v480_v35 = vld [vmem:[%s2427_s3 + $0x8] sm:$0xff]  ;;  %v497_v36 = vld [vmem:[%s2427_s3 + $0x90] sm:$0xff] }
  0x92   : > { %1673 = vmatprep.subr.bf16.mxu1 %v1672_v34  ;;  %v509_v34 = vld [vmem:[%s2427_s3 + $0xf0] sm:$0xff] }
  0x93   : > { %v299_v45 = vpop.permute.xlu1 %298  ;;  %v297_v46 = vpop.permute.xlu0 %296  ;;  %v1660_v47 = vpack.c.bf16 %v349_v42, %v347_v40  ;;  %v1662_v48 = vpack.c.bf16 %v348_v41, %v346_v39  ;;  %v498_v39 = vld [vmem:[%s2427_s3 + $0x98] sm:$0xff]  ;;  %v1674_v40 = vpack.c.bf16 %v480_v35, %v479_v33  ;;  %v481_v42 = vld [vmem:[%s2427_s3 + $0x10] sm:$0xff] }
  0x94   : > { %v301_v51 = vsel %vm300_vm4, %v297_v46, %v299_v45  ;;  %v302_v52 = vsel %vm300_vm4, %v299_v45, %v297_v46  ;;  %v1676_v41 = vpack.c.bf16 %v498_v39, %v497_v36  ;;  %v482_v45 = vld [vmem:[%s2427_s3 + $0x18] sm:$0xff]  ;;  %v499_v46 = vld [vmem:[%s2427_s3 + $0xa0] sm:$0xff]  ;;  %v493_v39 = vld [vmem:[%s2427_s3 + $0x70] sm:$0xff] }
  0x95   : > { %v352_v53 = vmul.f32 %v2000_v43, %v301_v51  ;;  %v353_v54 = vmul.f32 %v2005_v44, %v302_v52  ;;  %1661 = vmatprep.subr.bf16.mxu0 %v1660_v47  ;;  %v500_v47 = vld [vmem:[%s2427_s3 + $0xa8] sm:$0xff]  ;;  %1675 = vmatpush3.bf16.msra.mxu1 %v1674_v40  ;;  %v501_v52 = vld [vmem:[%s2427_s3 + $0xb0] sm:$0xff]  ;;  %v510_v35 = vld [vmem:[%s2427_s3 + $0xf8] sm:$0xff] }
  0x96   : > { %1663 = vmatpush1.bf16.msra.mxu0 %v1662_v48  ;;  %v1678_v48 = vpack.c.bf16 %v482_v45, %v481_v42  ;;  %1677 = vmatprep.subr.bf16.mxu1 %v1676_v41  ;;  %v484_v51 = vld [vmem:[%s2427_s3 + $0x28] sm:$0xff]  ;;  %v1700_v36 = vpack.c.bf16 %v510_v35, %v509_v34  ;;  %v494_v40 = vld [vmem:[%s2427_s3 + $0x78] sm:$0xff]  ;;  %v588_v34 = vld [vmem:[%s2425_s1 + $0x20] sm:$0xff] }
  0x97   : > { %v306_v55 = vpop.permute.xlu1 %305  ;;  %v304_v56 = vpop.permute.xlu0 %303  ;;  %v1664_v57 = vpack.c.bf16 %v353_v54, %v351_v49  ;;  %v1666_v58 = vpack.c.bf16 %v352_v53, %v350_v50  ;;  %v1680_v49 = vpack.c.bf16 %v500_v47, %v499_v46  ;;  %v483_v50 = vld [vmem:[%s2427_s3 + $0x20] sm:$0xff]  ;;  %v502_v53 = vld [vmem:[%s2427_s3 + $0xb8] sm:$0xff]  ;;  %v1702_v45 = vpack.c.bf16 %v494_v40, %v493_v39  ;;  %v589_v47 = vld [vmem:[%s2426_s2 + $0x8] sm:$0xff] }
  0x98   : > { %v308_v61 = vsel %vm307_vm5, %v304_v56, %v306_v55  ;;  %v309_v62 = vsel %vm307_vm5, %v306_v55, %v304_v56  ;;  %v1682_v54 = vpack.c.bf16 %v484_v51, %v483_v50  ;;  %v1684_v55 = vpack.c.bf16 %v502_v53, %v501_v52  ;;  %v485_v56 = vld [vmem:[%s2427_s3 + $0x30] sm:$0xff] }
  0x99   : > { %1665 = vmatprep.subr.bf16.mxu0 %v1664_v57  ;;  %v354_v8 = vmul.f32 %v2021_v59, %v308_v61  ;;  %v355_v13 = vmul.f32 %v2027_v60, %v309_v62  ;;  %1679 = vmatpush3.bf16.msra.mxu1 %v1678_v48  ;;  %v486_v57 = vld [vmem:[%s2427_s3 + $0x38] sm:$0xff]  ;;  %v503_v61 = vld [vmem:[%s2427_s3 + $0xc0] sm:$0xff]  ;;  %v504_v62 = vld [vmem:[%s2427_s3 + $0xc8] sm:$0xff] }
  0x9a   : > { %1667 = vmatpush1.bf16.msra.mxu0 %v1666_v58  ;;  %1681 = vmatprep.subr.bf16.mxu1 %v1680_v49  ;;  %v1686_v58 = vpack.c.bf16 %v486_v57, %v485_v56 }
  0x9b   : > { %v313_v1 = vpop.permute.xlu1 %312  ;;  %v311_v3 = vpop.permute.xlu0 %310 }
  0x9c   : > { %v315_v4 = vsel %vm314_vm6, %v311_v3, %v313_v1  ;;  %v316_v7 = vsel %vm314_vm6, %v313_v1, %v311_v3  ;;  %v1688_v1 = vpack.c.bf16 %v504_v62, %v503_v61  ;;  %v487_v3 = vld [vmem:[%s2427_s3 + $0x40] sm:$0xff] }
  0x9d   : > { %v356_v14 = vmul.f32 %v2036_v63, %v315_v4  ;;  %v357_v15 = vmul.f32 %v2041_v0, %v316_v7  ;;  %1683 = vmatpush3.bf16.msra.mxu1 %v1682_v54  ;;  %v488_v4 = vld [vmem:[%s2427_s3 + $0x48] sm:$0xff] }
  0x9e   : > { %1685 = vmatprep.subr.bf16.mxu1 %v1684_v55  ;;  %v1690_v7 = vpack.c.bf16 %v488_v4, %v487_v3 }
  0x9f   : > { %v320_v17 = vpop.permute.xlu1 %319  ;;  %v318_v19 = vpop.permute.xlu0 %317  ;;  %v1668_v20 = vpack.c.bf16 %v357_v15, %v355_v13  ;;  %v1670_v21 = vpack.c.bf16 %v356_v14, %v354_v8  ;;  %v505_v8 = vld [vmem:[%s2427_s3 + $0xd0] sm:$0xff]  ;;  %v506_v13 = vld [vmem:[%s2427_s3 + $0xd8] sm:$0xff] }
  0xa0   : > { %v322_v22 = vsel %vm321_vm7, %v318_v19, %v320_v17  ;;  %v323_v23 = vsel %vm321_vm7, %v320_v17, %v318_v19  ;;  %v1692_v14 = vpack.c.bf16 %v506_v13, %v505_v8  ;;  %v489_v15 = vld [vmem:[%s2427_s3 + $0x50] sm:$0xff]  ;;  %v490_v17 = vld [vmem:[%s2427_s3 + $0x58] sm:$0xff] }
  0xa1   : > { %v359_v24 = vmul.f32 %v2055_v16, %v323_v23  ;;  %1669 = vmatprep.subr.bf16.mxu0 %v1668_v20  ;;  %v358_v25 = vmul.f32 %v2060_v18, %v322_v22  ;;  %1687 = vmatpush3.bf16.msra.mxu1 %v1686_v58  ;;  %v1694_v19 = vpack.c.bf16 %v490_v17, %v489_v15  ;;  %v507_v20 = vld [vmem:[%s2427_s3 + $0xe0] sm:$0xff] }
  0xa2   : > { %1671 = vmatpush1.bf16.msra.mxu0 %v1670_v21  ;;  %1689 = vmatprep.subr.bf16.mxu1 %v1688_v1  ;;  %v508_v21 = vld [vmem:[%s2427_s3 + $0xe8] sm:$0xff] }
  0xa3   : > { %386 = vmatprep.subr.mxu0 %v359_v24  ;;  %v1696_v23 = vpack.c.bf16 %v508_v21, %v507_v20  ;;  %v491_v24 = vld [vmem:[%s2427_s3 + $0x60] sm:$0xff] }
  0xa5   : > { %1691 = vmatpush3.bf16.msra.mxu1 %v1690_v7 }
  0xa6   : > { %387 = vmatpush1.msra.mxu0 %v358_v25  ;;  %1693 = vmatprep.subr.bf16.mxu1 %v1692_v14  ;;  %v492_v25 = vld [vmem:[%s2427_s3 + $0x68] sm:$0xff] }
  0xa7   : > { %1515 = vmatmul.mubr.msk.f32.vlgmr.msra.gmra.mrb[0].mxu0 %vm366_vm8, %v265_v26  ;;  %1607 = vmatprep.subr.mxu0 %v1820_v2  ;;  %v1698_v26 = vpack.c.bf16 %v492_v25, %v491_v24  ;;  %v586_v24 = vld [vmem:[%s2425_s1 + $0x10] sm:$0xff] }
  0xa8   : > { %1609 = vmatprep.mubr.msk.f32.mxu0 %vm1824_vm15, %v1820_v2 }
  0xa9   : > { %1695 = vmatpush3.bf16.msra.mxu1 %v1694_v19 }
  0xaa   : > { %1697 = vmatprep.subr.bf16.mxu1 %v1696_v23 }
  0xad   : > { %1699 = vmatpush3.bf16.msra.mxu1 %v1698_v26 }
  0xae   : > { %1701 = vmatprep.subr.bf16.mxu1 %v1700_v36 }
  0xb0   : > { %v364_v22 = vpop.permute.xlu0 %363 }
  0xb1   : > { %1703 = vmatpush3.bf16.msra.mxu1 %v1702_v45 }
 0x17a   : > { %v436_v29 = vpop.f32.mrb[0].mxu0 }
 0x17b   : > { %v437_v30 = vadd.f32 %v436_v29, %v364_v22  ;;  %v438_v33 = vpop.f32.mrb[1].mxu0 }
 0x17c   : > { %v439_v42 = vadd.f32 %v438_v33, %v364_v22  ;;  %v590_v33 = vld [vmem:[%s2426_s2 + $0x10] sm:$0xff] }
 0x17d   : > { %v441_v41 = vmax.f32 %v437_v30, 0.0  ;;  %v587_v30 = vld [vmem:[%s2425_s1 + $0x18] sm:$0xff] }
 0x17e   : > { %v442_v46 = vmax.f32 %v439_v42, 0.0 }
 0x17f   : > { %455 = vrot.lane.b32.xlu0 %v441_v41, %s1822_s9  ;;  %443 = vrot.lane.b32.xlu1 %v441_v41, %s1818_s7 }
 0x183   : > { %467 = vrot.lane.b32.xlu0 %v441_v41, %s1823_s10  ;;  %445 = vrot.lane.b32.xlu1 %v442_v46, %s1818_s7 }
 0x187   : > { %594 = vperm.xlu0 %1772, %v589_v47   ;;  %457 = vrot.lane.b32.xlu1 %v442_v46, %s1822_s9 }
 0x18b   : > { %469 = vrot.lane.b32.xlu1 %v442_v46, %s1823_s10 }
 0x18f   : > { %599 = vperm.xlu1 %1773, %v590_v33  }
 0x1f1   : > { %v444_v48 = vpop.permute.xlu1 %443  ;;  %v456_v52 = vpop.permute.xlu0 %455 }
 0x1f5   : > { %v446_v49 = vpop.permute.xlu1 %445  ;;  %v468_v58 = vpop.permute.xlu0 %467 }
 0x1f6   : > { %v447_v50 = vsel %vm300_vm4, %v444_v48, %v446_v49  ;;  %v448_v51 = vsel %vm300_vm4, %v446_v49, %v444_v48 }
 0x1f7   : > { %vm449_vm9 = vcmp.gt.f32.partialorder %v447_v50, %v441_v41  ;;  %vm450_vm10 = vcmp.gt.f32.partialorder %v448_v51, %v442_v46 }
 0x1f8   : > { %v453_v54 = vsel %vm449_vm9, %v447_v50, %v441_v41  ;;  %v454_v55 = vsel %vm450_vm10, %v448_v51, %v442_v46  ;;  %v452_v13 = vsel %vm450_vm10, 1.0, %v1820_v2  ;;  %v451_v17 = vsel %vm449_vm9, 1.0, %v1820_v2 }
 0x1f9   : > { %v458_v53 = vpop.permute.xlu1 %457  ;;  %vm607_vm10 = vcmask 64512   ;;  %vm866_vm9 = vcmask 523264  }
 0x1fa   : > { %v459_v56 = vsel %vm314_vm6, %v456_v52, %v458_v53  ;;  %v460_v57 = vsel %vm314_vm6, %v458_v53, %v456_v52 }
 0x1fb   : > { %vm461_vm11 = vcmp.gt.f32.partialorder %v459_v56, %v453_v54  ;;  %vm462_vm12 = vcmp.gt.f32.partialorder %v460_v57, %v454_v55 }
 0x1fc   : > { %v465_v62 = vsel %vm461_vm11, %v459_v56, %v453_v54  ;;  %v466_v4 = vsel %vm462_vm12, %v460_v57, %v454_v55  ;;  %v464_v14 = vsel %vm462_vm12, 2.0, %v452_v13  ;;  %v463_v19 = vsel %vm461_vm11, 2.0, %v451_v17  ;;  %vm2260_vm11 = vmpackc.low %vm866_vm9, %vm866_vm9 }
 0x1fd   : > { %v470_v61 = vpop.permute.xlu1 %469 }
 0x1fe   : > { %v471_v1 = vsel %vm321_vm7, %v468_v58, %v470_v61  ;;  %v472_v3 = vsel %vm321_vm7, %v470_v61, %v468_v58 }
 0x1ff   : > { %vm473_vm13 = vcmp.gt.f32.partialorder %v471_v1, %v465_v62  ;;  %vm474_vm14 = vcmp.gt.f32.partialorder %v472_v3, %v466_v4 }
 0x200   : > { %v478_v7 = vsel %vm474_vm14, %v472_v3, %v466_v4  ;;  %v477_v8 = vsel %vm473_vm13, %v471_v1, %v465_v62  ;;  %v476_v15 = vsel %vm474_vm14, 3.0, %v464_v14  ;;  %v475_v20 = vsel %vm473_vm13, 3.0, %v463_v19 }
 0x201   : > { %575 = vmatprep.mubr.f32.mxu1 %v478_v7 }
 0x202   : > { %576 = vmatmul.mubr.f32.vlgmr.msra.gmra.mrb[0].mxu1 %v477_v8 }
 0x203   : > { %580 = vmatprep.mubr.f32.mxu1 %v476_v15 }
 0x206   : > { %581 = vmatmul.mubr.f32.gmra.mrb[2].mxu1 %v475_v20  ;;  %v595_v35 = vpop.permute.xlu0 %594 }
 0x207   : > { %1648 = vmatprep.mubr.msk.f32.mxu1 %vm1824_vm15, %v1820_v2 }
 0x20e   : > { %v600_v41 = vpop.permute.xlu1 %599 }
 0x2d5   : > { %v1577_v21 = vpop.f32.mrb[0].mxu1 }
 0x2d6   : > { %v1578_v22 = vpop.f32.mrb[1].mxu1 }
 0x2d7   : > { %v1579_v23 = vadd.f32 %v1578_v22, %v1577_v21 }
 0x2d9   : > { %v1580_v25 = vpop.f32.mrb[2].mxu1  ;;  %1608 = vmatpush3.msra.mxu0 %v1579_v23 }
 0x2da   : > { %v1581_v26 = vpop.f32.mrb[3].mxu1  ;;  %1610 = vmatmul.mubr.msk.f32.vlgmr.msra.gmra.mrb[2].mxu0 %vm607_vm10, %v586_v24  ;;  %v1053_v24 = vld [vmem:[%s2426_s2 + $0x20] sm:$0xff] }
 0x2db   : > { %v2206_v29 = vadd.f32 %v1581_v26, %v1580_v25  ;;  %1612 = vmatprep.mubr.msk.f32.mxu0 %vm1824_vm15, %v1820_v2 }
 0x2de   : > { %1613 = vmatmul.mubr.msk.f32.gmra.mrb[4].mxu0 %vm607_vm10, %v587_v30 }
 0x2df   : > { %1615 = vmatprep.mubr.msk.f32.mxu0 %vm1824_vm15, %v1820_v2 }
 0x2e2   : > { %1616 = vmatmul.mubr.msk.f32.gmra.mrb[6].mxu0 %vm607_vm10, %v588_v34 }
 0x3ad   : > { %v683_v36 = vpop.f32.mrb[2].mxu0 }
 0x3ae   : > { %v684_v39 = vadd.f32 %v683_v36, %v595_v35  ;;  %v1611_v40 = vpop.f32.mrb[3].mxu0 }
 0x3b0   : > { %697 = vxpose.xlu0.b32.start.end [1/1] (short) (narrow) %v684_v39, 64 }
 0x3b1   : > { %v688_v42 = vpop.f32.mrb[4].mxu0 }
 0x3b2   : > { %v689_v45 = vadd.f32 %v688_v42, %v600_v41  ;;  %v1614_v46 = vpop.f32.mrb[5].mxu0 }
 0x3b4   : > { %1618 = vmatprep.subr.mxu0 %v689_v45 }
 0x3b5   : > { %1619 = vmatpush3.msra.mxu0 %v689_v45  ;;  %v2224_v47 = vpop.f32.mrb[6].mxu0 }
 0x3b6   : > { %1651 = vmatprep.subr.mxu0 %v1820_v2  ;;  %v1617_v48 = vpop.f32.mrb[7].mxu0 }
 0x430   : > { %v713_v49 = vpop.trf.xlu0 }
 0x431   : > { %1620 = vmatprep.mubr.msk.f32.mxu0 %vm607_vm10, %v713_v49 }
 0x434   : > { %v714_v50 = vpop.trf.xlu0 }
 0x435   : > { %1621 = vmatmul.mubr.msk.f32.vlgmr.msra.gmra.mrb[8].mxu0 %vm607_vm10, %v714_v50 }
 0x438   : > { %v715_v51 = vpop.trf.xlu0 }
 0x439   : > { %1623 = vmatprep.mubr.msk.f32.mxu0 %vm607_vm10, %v715_v51 }
 0x43c   : > { %v716_v52 = vpop.trf.xlu0 }
 0x43d   : > { %1624 = vmatmul.mubr.msk.f32.gmra.mrb[10].mxu0 %vm607_vm10, %v716_v52 }
 0x440   : > { %v717_v53 = vpop.trf.xlu0 }
 0x441   : > { %1626 = vmatprep.mubr.msk.f32.mxu0 %vm607_vm10, %v717_v53 }
 0x444   : > { %v718_v54 = vpop.trf.xlu0 }
 0x445   : > { %1627 = vmatmul.mubr.msk.f32.gmra.mrb[12].mxu0 %vm607_vm10, %v718_v54 }
 0x448   : > { %v719_v55 = vpop.trf.xlu0 }
 0x449   : > { %1629 = vmatprep.mubr.msk.f32.mxu0 %vm607_vm10, %v719_v55 }
 0x44c   : > { %v720_v56 = vpop.trf.xlu0 }
 0x44d   : > { %1630 = vmatmul.mubr.msk.f32.gmra.mrb[14].mxu0 %vm607_vm10, %v720_v56 }
 0x44e   : > { %1653 = vmatprep.mubr.msk.f32.mxu0 %vm1824_vm15, %v1820_v2 }
 0x508   : > { %v1622_v57 = vpop.f32.mrb[8].mxu0 }
 0x509   : > { %v859_v58 = vmul.f32 0.35355338, %v1622_v57  ;;  %v819_v61 = vpop.f32.mrb[9].mxu0 }
 0x50a   : > { %v858_v62 = vmul.f32 0.35355338, %v819_v61 }
 0x50b   : > { %v870_v1 = vsel %vm866_vm9, %v859_v58, -inf }
 0x50c   : > { %871 = vmax.xlane.f32.xlu0 %v870_v1  ;;  %v867_v3 = vsel %vm866_vm9, %v858_v62, -inf }
 0x50d   : > { %868 = vmax.xlane.f32.xlu1 %v867_v3 }
 0x510   : > { %v1625_v4 = vpop.f32.mrb[10].mxu0 }
 0x511   : > { %v861_v7 = vmul.f32 0.35355338, %v1625_v4  ;;  %v829_v8 = vpop.f32.mrb[11].mxu0 }
 0x512   : > { %v860_v13 = vmul.f32 0.35355338, %v829_v8 }
 0x513   : > { %v876_v14 = vsel %vm866_vm9, %v861_v7, -inf }
 0x514   : > { %877 = vmax.xlane.f32.xlu1 %v876_v14  ;;  %v873_v15 = vsel %vm866_vm9, %v860_v13, -inf }
 0x518   : > { %874 = vmax.xlane.f32.xlu1 %v873_v15  ;;  %v1628_v17 = vpop.f32.mrb[12].mxu0 }
 0x519   : > { %v863_v19 = vmul.f32 0.35355338, %v1628_v17  ;;  %v839_v20 = vpop.f32.mrb[13].mxu0 }
 0x51a   : > { %v862_v21 = vmul.f32 0.35355338, %v839_v20 }
 0x51b   : > { %v882_v22 = vsel %vm866_vm9, %v863_v19, -inf }
 0x51c   : > { %883 = vmax.xlane.f32.xlu1 %v882_v22  ;;  %v879_v23 = vsel %vm866_vm9, %v862_v21, -inf }
 0x520   : > { %880 = vmax.xlane.f32.xlu1 %v879_v23  ;;  %v1631_v25 = vpop.f32.mrb[14].mxu0 }
 0x521   : > { %v849_v26 = vpop.f32.mrb[15].mxu0  ;;  %v865_v33 = vmul.f32 0.35355338, %v1631_v25 }
 0x522   : > { %v864_v30 = vmul.f32 0.35355338, %v849_v26  ;;  %1056 = vperm.xlu0 %1772, %v1053_v24  }
 0x523   : > { %v888_v35 = vsel %vm866_vm9, %v865_v33, -inf }
 0x524   : > { %v885_v34 = vsel %vm866_vm9, %v864_v30, -inf }
 0x525   : > { %886 = vmax.xlane.f32.xlu1 %v885_v34 }
 0x529   : > { %889 = vmax.xlane.f32.xlu1 %v888_v35 }
 0x599   : > { %v872_v36 = vpop.xlane.xlu0 %871 }
 0x59a   : > { %v892_v39 = vsub.f32 %v859_v58, %v872_v36  ;;  %v869_v40 = vpop.xlane.xlu1 %868  ;;  %v591_v36 = vld [vmem:[%s2426_s2 + $0x18] sm:$0xff] }
 0x59b   : > { %v891_v41 = vsub.f32 %v858_v62, %v869_v40 }
 0x59c   : > { %v901_v42 = vmul.f32 1.442695, %v892_v39 }
 0x59d   : > { %v899_v45 = vmul.f32 1.442695, %v891_v41 }
 0x59e   : > { %1774 = vpow2.f32 %v901_v42 }
 0x59f   : > { %1776 = vpow2.f32 %v899_v45 }
 0x5a1   : > { %v878_v46 = vpop.xlane.xlu1 %877 }
 0x5a2   : > { %v894_v48 = vsub.f32 %v861_v7, %v878_v46 }
 0x5a4   : > { %v905_v49 = vmul.f32 1.442695, %v894_v48 }
 0x5a5   : > { %v875_v50 = vpop.xlane.xlu1 %874 }
 0x5a6   : > { %1778 = vpow2.f32 %v905_v49  ;;  %v893_v51 = vsub.f32 %v860_v13, %v875_v50 }
 0x5a8   : > { %v1775_v52 = vpop.eup %1774  ;;  %v903_v53 = vmul.f32 1.442695, %v893_v51  ;;  %v1146_v51 = vld [vmem:[%s2428_s4 + $0xf8] sm:$0xff] }
 0x5a9   : > { %v884_v54 = vpop.xlane.xlu1 %883  ;;  %v918_v55 = vsel %vm866_vm9, %v1775_v52, 0.0  ;;  %v1777_v56 = vpop.eup %1776 }
 0x5aa   : > { %1780 = vpow2.f32 %v903_v53  ;;  %v896_v57 = vsub.f32 %v863_v19, %v884_v54  ;;  %919 = vadd.xlane.f32.xlu1 %v918_v55  ;;  %v915_v62 = vsel %vm866_vm9, %v1777_v56, 0.0 }
 0x5ac   : > { %v909_v58 = vmul.f32 1.442695, %v896_v57 }
 0x5ad   : > { %v881_v61 = vpop.xlane.xlu1 %880 }
 0x5ae   : > { %1782 = vpow2.f32 %v909_v58  ;;  %v895_v1 = vsub.f32 %v862_v21, %v881_v61  ;;  %916 = vadd.xlane.f32.xlu1 %v915_v62 }
 0x5b0   : > { %v1779_v3 = vpop.eup %1778  ;;  %v907_v4 = vmul.f32 1.442695, %v895_v1 }
 0x5b1   : > { %v924_v7 = vsel %vm866_vm9, %v1779_v3, 0.0 }
 0x5b2   : > { %1784 = vpow2.f32 %v907_v4  ;;  %925 = vadd.xlane.f32.xlu1 %v924_v7  ;;  %v887_v8 = vpop.xlane.xlu1 %886 }
 0x5b3   : > { %v897_v14 = vsub.f32 %v864_v30, %v887_v8 }
 0x5b4   : > { %v1781_v13 = vpop.eup %1780 }
 0x5b5   : > { %v921_v15 = vsel %vm866_vm9, %v1781_v13, 0.0  ;;  %v911_v22 = vmul.f32 1.442695, %v897_v14 }
 0x5b6   : > { %922 = vadd.xlane.f32.xlu1 %v921_v15  ;;  %v890_v17 = vpop.xlane.xlu1 %889 }
 0x5b7   : > { %v898_v19 = vsub.f32 %v865_v33, %v890_v17  ;;  %v1825_v33 = vmov 0.0|0.0  }
 0x5b8   : > { %v1783_v20 = vpop.eup %1782  ;;  %1704 = vmatprep.subr.bf16.mxu1 %v1825_v33 }
 0x5b9   : > { %v913_v23 = vmul.f32 1.442695, %v898_v19  ;;  %v930_v21 = vsel %vm866_vm9, %v1783_v20, 0.0 }
 0x5ba   : > { %931 = vadd.xlane.f32.xlu1 %v930_v21  ;;  %v1136_v21 = vld [vmem:[%s2428_s4 + $0xa8] sm:$0xff] }
 0x5bb   : > { %1786 = vpow2.f32 %v913_v23  ;;  %v1134_v23 = vld [vmem:[%s2428_s4 + $0x98] sm:$0xff] }
 0x5bc   : > { %v1785_v24 = vpop.eup %1784  ;;  %1788 = vpow2.f32 %v911_v22 }
 0x5bd   : > { %v927_v25 = vsel %vm866_vm9, %v1785_v24, 0.0 }
 0x5be   : > { %928 = vadd.xlane.f32.xlu1 %v927_v25  ;;  %v1138_v25 = vld [vmem:[%s2428_s4 + $0xb8] sm:$0xff] }
 0x5c5   : > { %v1787_v26 = vpop.eup %1786 }
 0x5c6   : > { %v936_v30 = vsel %vm866_vm9, %v1787_v26, 0.0  ;;  %v1789_v34 = vpop.eup %1788 }
 0x5c7   : > { %937 = vadd.xlane.f32.xlu1 %v936_v30  ;;  %v933_v35 = vsel %vm866_vm9, %v1789_v34, 0.0  ;;  %v1720_v30 = vpack.c.bf16 %v1136_v21, %v1134_v23 }
 0x5cb   : > { %934 = vadd.xlane.f32.xlu1 %v933_v35 }
 0x5dc   : > { %604 = vperm.xlu1 %1773, %v591_v36  }
 0x637   : > { %v920_v39 = vpop.xlane.xlu1 %919 }
 0x638   : > { %1790 = vrcp.f32 %v920_v39  ;;  %v1137_v39 = vld [vmem:[%s2428_s4 + $0xb0] sm:$0xff] }
 0x63b   : > { %v917_v40 = vpop.xlane.xlu1 %916 }
 0x63c   : > { %1792 = vrcp.f32 %v917_v40  ;;  %v1139_v40 = vld [vmem:[%s2428_s4 + $0xc0] sm:$0xff] }
 0x63f   : > { %v926_v41 = vpop.xlane.xlu1 %925 }
 0x640   : > { %1794 = vrcp.f32 %v926_v41 }
 0x642   : > { %v1791_v45 = vpop.eup %1790 }
 0x643   : > { %v923_v42 = vpop.xlane.xlu1 %922  ;;  %v948_v48 = vmul.f32 %v1791_v45, %v1775_v52  ;;  %v1144_v45 = vld [vmem:[%s2428_s4 + $0xe8] sm:$0xff] }
 0x644   : > { %1796 = vrcp.f32 %v923_v42  ;;  %v1142_v42 = vld [vmem:[%s2428_s4 + $0xd8] sm:$0xff] }
 0x646   : > { %v1793_v46 = vpop.eup %1792 }
 0x647   : > { %v947_v49 = vmul.f32 %v1793_v46, %v1777_v56  ;;  %v932_v50 = vpop.xlane.xlu1 %931  ;;  %v1726_v46 = vpack.c.bf16 %v1139_v40, %v1137_v39 }
 0x648   : > { %1798 = vrcp.f32 %v932_v50  ;;  %v1143_v50 = vld [vmem:[%s2428_s4 + $0xe0] sm:$0xff] }
 0x649   : > { %v1705_v53 = vpack.c.bf16 %v948_v48, %v947_v49  ;;  %v1728_v48 = vpack.c.bf16 %v1144_v45, %v1142_v42  ;;  %v1141_v49 = vld [vmem:[%s2428_s4 + $0xd0] sm:$0xff] }
 0x64a   : > { %v1795_v55 = vpop.eup %1794 }
 0x64b   : > { %1707 = vmatpush3.bf16.xpose.msk.msra.mxu1 %vm2260_vm11, %v1705_v53  ;;  %v929_v54 = vpop.xlane.xlu1 %928  ;;  %v950_v58 = vmul.f32 %v1795_v55, %v1779_v3  ;;  %v1148_v53 = vld [vmem:[%s2428_s4 + $0x108] sm:$0xff] }
 0x64c   : > { %1800 = vrcp.f32 %v929_v54  ;;  %1708 = vmatprep.subr.bf16.mxu1 %v1825_v33  ;;  %v1730_v54 = vpack.c.bf16 %v1143_v50, %v1141_v49  ;;  %v1732_v55 = vpack.c.bf16 %v1148_v53, %v1146_v51 }
 0x64e   : > { %v1797_v57 = vpop.eup %1796 }
 0x64f   : > { %v949_v52 = vmul.f32 %v1797_v57, %v1781_v13  ;;  %v1145_v57 = vld [vmem:[%s2428_s4 + $0xf0] sm:$0xff] }
 0x651   : > { %v1709_v56 = vpack.c.bf16 %v950_v58, %v949_v52  ;;  %v1147_v58 = vld [vmem:[%s2428_s4 + $0x100] sm:$0xff] }
 0x652   : > { %v1799_v61 = vpop.eup %1798  ;;  %v1734_v52 = vpack.c.bf16 %v1147_v58, %v1145_v57 }
 0x653   : > { %1711 = vmatpush3.bf16.xpose.msk.msra.mxu1 %vm2260_vm11, %v1709_v56  ;;  %v952_v4 = vmul.f32 %v1799_v61, %v1783_v20  ;;  %v1057_v56 = vpop.permute.xlu0 %1056 }
 0x654   : > { %v938_v62 = vpop.xlane.xlu1 %937  ;;  %1712 = vmatprep.subr.bf16.mxu1 %v1825_v33 }
 0x655   : > { %1802 = vrcp.f32 %v938_v62 }
 0x656   : > { %v1801_v1 = vpop.eup %1800 }
 0x657   : > { %v951_v7 = vmul.f32 %v1801_v1, %v1785_v24  ;;  %v1133_v24 = vld [vmem:[%s2428_s4 + $0x90] sm:$0xff] }
 0x658   : > { %v935_v8 = vpop.xlane.xlu1 %934 }
 0x659   : > { %1804 = vrcp.f32 %v935_v8  ;;  %v1713_v14 = vpack.c.bf16 %v952_v4, %v951_v7  ;;  %v1236_v4 = vshrl.u32 %v270_v5, 7  ;;  %v1539_v8 = vld [vmem:[%s2428_s4 + $0x110] ss:$8 sm:$0x3]  ;;  %v1334_v5 = vld [vmem:[%s2426_s2 + $0x28] sm:$0xf] }
 0x65b   : > { %1715 = vmatpush3.bf16.xpose.msk.msra.mxu1 %vm2260_vm11, %v1713_v14  ;;  %v1237_v7 = vsub.s32 0, %v1236_v4  ;;  %v1241_v14 = vsub.s32 1, %v1236_v4 }
 0x65c   : > { %1716 = vmatprep.subr.bf16.mxu1 %v1825_v33  ;;  %v605_v22 = vpop.permute.xlu1 %604 }
 0x65d   : > { %v694_v20 = vadd.f32 %v2224_v47, %v605_v22  ;;  %v1135_v47 = vld [vmem:[%s2428_s4 + $0xa0] sm:$0xff] }
 0x65e   : > { %v1722_v35 = vpack.c.bf16 %v1135_v47, %v1133_v24 }
 0x65f   : > { %v1803_v3 = vpop.eup %1802 }
 0x660   : > { %v954_v15 = vmul.f32 %v1803_v3, %v1787_v26  ;;  %v1140_v26 = vld [vmem:[%s2428_s4 + $0xc8] sm:$0xff] }
 0x661   : > { %v1724_v36 = vpack.c.bf16 %v1140_v26, %v1138_v25 }
 0x663   : > { %v1805_v13 = vpop.eup %1804 }
 0x664   : > { %v953_v17 = vmul.f32 %v1805_v13, %v1789_v34  ;;  %v1052_v34 = vld [vmem:[%s2425_s1 + $0x28] sm:$0xff] }
 0x666   : > { %v1717_v19 = vpack.c.bf16 %v954_v15, %v953_v17  ;;  %v1238_v15 = vrot.slane %v1539_v8, %v1237_v7  ;;  %v1242_v17 = vrot.slane %v1539_v8, %v1241_v14 }
 0x668   : > { %1719 = vmatpush3.bf16.xpose.msk.msra.mxu1 %vm2260_vm11, %v1717_v19 }
 0x66f   : > { %1649 = vmatmul.mubr.msk.f32.vlgmr.msra.gmra.mrb[4].mxu1 %vm866_vm9, %v694_v20 }
 0x670   : > { %1407 = vmatprep.mubr.f32.mxu1 %v1820_v2 }
 0x742   : > { %v1048_v33 = vpop.f32.mrb[4].mxu1 }
 0x743   : > { %v1650_v41 = vpop.f32.mrb[5].mxu1  ;;  %1652 = vmatpush3.msra.mxu0 %v1048_v33 }
 0x744   : > { %1654 = vmatmul.mubr.msk.f32.vlgmr.msra.gmra.mrb[16].mxu0 %vm607_vm10, %v1052_v34  ;;  %1721 = vmatprep.subr.bf16.mxu0 %v1720_v30 }
 0x745   : > { %1723 = vmatpush1.bf16.msra.mxu0 %v1722_v35  ;;  %1219 = vmatprep.mubr.f32.mxu0 %v1820_v2 }
 0x746   : > { %1725 = vmatprep.subr.bf16.mxu0 %v1724_v36 }
 0x749   : > { %1727 = vmatpush1.bf16.msra.mxu0 %v1726_v46 }
 0x74a   : > { %1729 = vmatprep.subr.bf16.mxu0 %v1728_v48 }
 0x74d   : > { %1731 = vmatpush1.bf16.msra.mxu0 %v1730_v54 }
 0x74e   : > { %1733 = vmatprep.subr.bf16.mxu0 %v1732_v55 }
 0x751   : > { %1735 = vmatpush1.bf16.msra.mxu0 %v1734_v52 }
 0x817   : > { %v1128_v61 = vpop.f32.mrb[16].mxu0 }
 0x818   : > { %v1129_v62 = vadd.f32 %v1128_v61, %v1057_v56  ;;  %v1655_v1 = vpop.f32.mrb[17].mxu0 }
 0x81a   : > { %1132 = vst.msk [vmem:[%s257_s12] sm:$0xff] %vm866_vm9, %v1129_v62  ;;  %1537 = vmatmul.mubr.msk.f32.vlgmr.msra.gmra.mrb[18].mxu0 %vm866_vm9, %v1129_v62 }
 0x81b   : > { %1225 = vmatprep.mubr.f32.mxu0 %v1820_v2 }
 0x81e   : > { %1538 = vmatmul.mubr.msk.f32.gmra.mrb[20].mxu0 %vm866_vm9, %v2206_v29 }
 0x8ed   : > { %v1221_v3 = vpop.f32.mrb[18].mxu0 }
 0x8ee   : > { %v1223_v13 = vpop.f32.mrb[19].mxu0 }
 0x8f1   : > { %v1227_v19 = vpop.f32.mrb[20].mxu0 }
 0x8f2   : > { %vm1245_vm12 = vcmp.eq.f32.partialorder %v1227_v19, %v1238_v15  ;;  %v1229_v22 = vpop.f32.mrb[21].mxu0 }
 0x8f3   : > { %v1247_v20 = vsel %vm1245_vm12, %v1221_v3, 0.0  ;;  %vm1246_vm13 = vcmp.eq.f32.partialorder %v1229_v22, %v1242_v17 }
 0x8f4   : > { %v1248_v2 = vsel %vm1246_vm13, %v1223_v13, 0.0  ;;  %1262 = vrot.lane.b32.xlu0 %v1247_v20, %s1816_s29  ;;  %1250 = vrot.lane.b32.xlu1 %v1247_v20, %s1815_s28  ;;  %v1324_v61 = vmul.f32 %v1247_v20, %v1991_v38 }
 0x8f8   : > { %1268 = vrot.lane.b32.xlu0 %v1247_v20, %s1817_s30  ;;  %1256 = vrot.lane.b32.xlu1 %v1247_v20, %s1814_s27 }
 0x8fc   : > { %1274 = vrot.lane.b32.xlu0 %v1247_v20, %s1818_s7  ;;  %1252 = vrot.lane.b32.xlu1 %v1248_v2, %s1815_s28 }
 0x900   : > { %1280 = vrot.lane.b32.xlu0 %v1247_v20, %s1819_s8  ;;  %1258 = vrot.lane.b32.xlu1 %v1248_v2, %s1814_s27 }
 0x904   : > { %1286 = vrot.lane.b32.xlu0 %v1247_v20, %s1822_s9  ;;  %1264 = vrot.lane.b32.xlu1 %v1248_v2, %s1816_s29 }
 0x908   : > { %1292 = vrot.lane.b32.xlu0 %v1247_v20, %s1823_s10  ;;  %1270 = vrot.lane.b32.xlu1 %v1248_v2, %s1817_s30 }
 0x90c   : > { %1337 = vperm.xlu0 %1772, %v1334_v5   ;;  %1276 = vrot.lane.b32.xlu1 %v1248_v2, %s1818_s7  ;;  %s262_s7 = scalar_lea.vmem %s2430_s6, %s1512_s25 }
 0x910   : > { %1282 = vrot.lane.b32.xlu1 %v1248_v2, %s1819_s8 }
 0x914   : > { %1288 = vrot.lane.b32.xlu1 %v1248_v2, %s1822_s9 }
 0x918   : > { %1294 = vrot.lane.b32.xlu1 %v1248_v2, %s1823_s10 }
 0x966   : > { %v1251_v29 = vpop.permute.xlu1 %1250  ;;  %v1263_v21 = vpop.permute.xlu0 %1262 }
 0x96a   : > { %v1257_v23 = vpop.permute.xlu1 %1256  ;;  %v1269_v26 = vpop.permute.xlu0 %1268 }
 0x96e   : > { %v1253_v24 = vpop.permute.xlu1 %1252  ;;  %v1275_v46 = vpop.permute.xlu0 %1274 }
 0x96f   : > { %v1254_v47 = vsel %vm272_vm1, %v1251_v29, %v1253_v24  ;;  %v1255_v25 = vsel %vm272_vm1, %v1253_v24, %v1251_v29 }
 0x970   : > { %v1316_v33 = vmul.f32 %v1255_v25, %v1928_v10  ;;  %v1317_v36 = vmul.f32 %v1254_v47, %v1933_v11 }
 0x972   : > { %v1259_v30 = vpop.permute.xlu1 %1258  ;;  %v1281_v54 = vpop.permute.xlu0 %1280 }
 0x973   : > { %v1260_v34 = vsel %vm279_vm0, %v1257_v23, %v1259_v30  ;;  %v1261_v35 = vsel %vm279_vm0, %v1259_v30, %v1257_v23 }
 0x974   : > { %v1318_v39 = vmul.f32 %v1261_v35, %v1922_v9  ;;  %v1319_v40 = vmul.f32 %v1260_v34, %v1938_v12 }
 0x976   : > { %v1738_v41 = vpack.c.bf16 %v1318_v39, %v1316_v33  ;;  %v1265_v42 = vpop.permute.xlu1 %1264  ;;  %v1736_v45 = vpack.c.bf16 %v1319_v40, %v1317_v36  ;;  %v1287_v4 = vpop.permute.xlu0 %1286 }
 0x977   : > { %v1266_v48 = vsel %vm286_vm2, %v1263_v21, %v1265_v42  ;;  %v1267_v49 = vsel %vm286_vm2, %v1265_v42, %v1263_v21 }
 0x978   : > { %1737 = vmatprep.subr.bf16.mxu1 %v1736_v45  ;;  %v1320_v11 = vmul.f32 %v1267_v49, %v1956_v27  ;;  %v1321_v12 = vmul.f32 %v1266_v48, %v1962_v28 }
 0x979   : > { %1739 = vmatpush1.bf16.msra.mxu1 %v1738_v41 }
 0x97a   : > { %v1271_v50 = vpop.permute.xlu1 %1270  ;;  %v1293_v15 = vpop.permute.xlu0 %1292 }
 0x97b   : > { %v1272_v10 = vsel %vm293_vm3, %v1269_v26, %v1271_v50  ;;  %v1273_v9 = vsel %vm293_vm3, %v1271_v50, %v1269_v26 }
 0x97c   : > { %v1322_v51 = vmul.f32 %v1273_v9, %v1971_v31  ;;  %v1323_v53 = vmul.f32 %v1272_v10, %v1976_v32  ;;  %v1325_v31 = vmul.f32 %v1248_v2, %v1986_v37 }
 0x97e   : > { %v1742_v55 = vpack.c.bf16 %v1322_v51, %v1320_v11  ;;  %v1277_v57 = vpop.permute.xlu1 %1276  ;;  %v1740_v58 = vpack.c.bf16 %v1323_v53, %v1321_v12 }
 0x97f   : > { %v1278_v52 = vsel %vm300_vm4, %v1275_v46, %v1277_v57  ;;  %v1279_v56 = vsel %vm300_vm4, %v1277_v57, %v1275_v46 }
 0x980   : > { %v1326_v27 = vmul.f32 %v1278_v52, %v2000_v43  ;;  %v1327_v28 = vmul.f32 %v1279_v56, %v2005_v44  ;;  %1741 = vmatprep.subr.bf16.mxu1 %v1740_v58 }
 0x981   : > { %1743 = vmatpush1.bf16.msra.mxu1 %v1742_v55 }
 0x982   : > { %v1746_v32 = vpack.c.bf16 %v1326_v27, %v1324_v61  ;;  %v1283_v62 = vpop.permute.xlu1 %1282  ;;  %v1744_v1 = vpack.c.bf16 %v1327_v28, %v1325_v31 }
 0x983   : > { %v1284_v7 = vsel %vm307_vm5, %v1281_v54, %v1283_v62  ;;  %v1285_v8 = vsel %vm307_vm5, %v1283_v62, %v1281_v54 }
 0x984   : > { %1745 = vmatprep.subr.bf16.mxu1 %v1744_v1  ;;  %v1328_v44 = vmul.f32 %v1284_v7, %v2021_v59  ;;  %v1329_v14 = vmul.f32 %v1285_v8, %v2027_v60  ;;  %v1249_v60 = vld [vmem:[%s2425_s1 + $0x8] sm:$0xf] }
 0x985   : > { %1747 = vmatpush1.bf16.msra.mxu1 %v1746_v32 }
 0x986   : > { %v1289_v38 = vpop.permute.xlu1 %1288 }
 0x987   : > { %v1290_v43 = vsel %vm314_vm6, %v1287_v4, %v1289_v38  ;;  %v1291_v37 = vsel %vm314_vm6, %v1289_v38, %v1287_v4 }
 0x988   : > { %v1330_v3 = vmul.f32 %v1290_v43, %v2036_v63  ;;  %v1331_v13 = vmul.f32 %v1291_v37, %v2041_v0 }
 0x98a   : > { %v1750_v17 = vpack.c.bf16 %v1330_v3, %v1328_v44  ;;  %v1295_v19 = vpop.permute.xlu1 %1294  ;;  %v1748_v22 = vpack.c.bf16 %v1331_v13, %v1329_v14 }
 0x98b   : > { %v1297_v20 = vsel %vm321_vm7, %v1295_v19, %v1293_v15  ;;  %v1296_v2 = vsel %vm321_vm7, %v1293_v15, %v1295_v19  ;;  %v1338_v63 = vpop.permute.xlu0 %1337 }
 0x98c   : > { %v1333_v5 = vmul.f32 %v1297_v20, %v2055_v16  ;;  %1749 = vmatprep.subr.bf16.mxu1 %v1748_v22  ;;  %v1332_v59 = vmul.f32 %v1296_v2, %v2060_v18 }
 0x98d   : > { %1751 = vmatpush1.bf16.msra.mxu1 %v1750_v17 }
 0x98e   : > { %1359 = vmatprep.subr.mxu1 %v1333_v5 }
 0x991   : > { %1360 = vmatpush1.msra.mxu1 %v1332_v59 }
 0x992   : > { %1540 = vmatmul.mubr.msk.f32.vlgmr.msra.gmra.mrb[6].mxu1 %vm366_vm8, %v1249_v60 }
 0xa65   : > { %v1409_v0 = vpop.f32.mrb[6].mxu1 }
 0xa66   : > { %v1410_v29 = vadd.f32 %v1409_v0, %v1338_v63  ;;  %v1411_v23 = vpop.f32.mrb[7].mxu1 }
 0xa67   : > { %v1412_v6 = vadd.f32 %v1411_v23, %v1338_v63 }
 0xa69   : > { %v1416_v16 = vcombine.low %v1410_v29, %v1412_v6 }
 0xa6b   : > { %1418 = vst [vmem:[%s262_s7] sm:$0xff] %v1416_v16 }
 0xa6c PF: > { %s17_s21 = sadd.s32 1, %s1812_s21  }
 0xa6d   : > { %p14_p4 = scmp.ge.s32.totalorder %s17_s21, 4  }
 0xa6f   :  { %16 = sbr.rel (!%p14_p4) target bundleno = 1 (0x1), region = 83 }

</bundles_post_ra>
